<compile_context>
chip_gen: v7x
topology: tpu7x:2x2x1
jax: 0.10.0
libtpu: 0.0.40
codegen_flags: <defaults>
</compile_context>

<pallas_src>
import functools

import jax
import jax.numpy as jnp
from jax import lax
from jax.experimental import pallas as pl
from jax.experimental.pallas import tpu as pltpu

BN_EPS = 1e-5


def _conv_stats_kernel(x_ref, w_ref, mask_ref, y_ref, sum_ref, sumsq_ref, *,
                       kh, kw, wp, lx, stride, dilation):
    """Phase 1 (one image per grid step): fused-im2col conv + per-channel stats.

    x_ref:    (1, Cin, Lpad) f32  -- padded input, (Hp, Wp) flattened row-major.
    w_ref:    (KH*KW, Cout, Cin) f32 -- resident, one (Cout, Cin) matrix per tap.
    mask_ref: (1, Lx) f32 -- 1.0 on valid output columns, 0.0 on wraparound junk.
    y_ref:    (1, Cout, Lx) f32 -- transposed conv output (incl. junk columns).
    sum_ref / sumsq_ref: (1, Cout, 1) f32 -- per-image partial BN statistics.
    """
    cout = w_ref.shape[1]
    acc = jnp.zeros((cout, lx), jnp.float32)
    for ki in range(kh):
        for kj in range(kw):
            base = dilation * (ki * wp + kj)
            if stride == 1:
                xs = x_ref[0, :, base:base + lx]                       # (Cin, Lx)
            else:
                # TODO(synk): stride>1 path is untested; spec module uses stride=1.
                xs = x_ref[0, :, base:base + stride * (lx - 1) + 1][:, ::stride]
            wk = w_ref[ki * kw + kj]                                   # (Cout, Cin)
            acc = acc + jnp.dot(wk, xs, preferred_element_type=jnp.float32)
    y_ref[0] = acc

    valid = mask_ref[...]                                              # (1, Lx)
    sum_ref[0] = jnp.sum(acc * valid, axis=1, keepdims=True)           # (Cout, 1)
    sumsq_ref[0] = jnp.sum(acc * acc * valid, axis=1, keepdims=True)   # (Cout, 1)


def _bn_relu_kernel(y_ref, scale_ref, shift_ref, o_ref, *, ow):
    """Phase 2 (one image per grid step): folded-BN scale/shift + ReLU.

    y_ref: (1, Cout, OH, Wp); scale/shift: (Cout, 1, 1); o_ref: (1, Cout, OH, OW).
    The trailing Wp-OW lanes of each row are wraparound junk and are dropped.
    """
    y = y_ref[...][:, :, :, :ow]
    o_ref[...] = jnp.maximum(y * scale_ref[...] + shift_ref[...], 0.0)


@functools.partial(jax.jit, static_argnames=("stride", "padding", "dilation"))
def conv_bn_relu(x_nchw, weight, gamma, beta, *, stride=1, padding=0, dilation=1):
    """x_nchw: (N, Cin, H, W) f32; weight: (Cout, Cin, KH, KW) f32;
    gamma/beta: (Cout,) f32. Returns (N, Cout, OH, OW) f32 (NCHW, like PyTorch)."""
    n, cin, h, w = x_nchw.shape
    cout, _, kh, kw = weight.shape

    hp, wp = h + 2 * padding, w + 2 * padding
    oh = (h + 2 * padding - dilation * (kh - 1) - 1) // stride + 1
    ow = (w + 2 * padding - dilation * (kw - 1) - 1) // stride + 1
    lx = oh * wp                                  # extended columns per image
    base_max = dilation * ((kh - 1) * wp + (kw - 1))
    lpad = max(hp * wp, base_max + stride * (lx - 1) + 1)

    x_pad = jnp.pad(x_nchw.astype(jnp.float32),
                    ((0, 0), (0, 0), (padding, padding), (padding, padding)))
    x_flat = x_pad.reshape(n, cin, hp * wp)
    x_flat = jnp.pad(x_flat, ((0, 0), (0, 0), (0, lpad - hp * wp)))

    # (Cout, Cin, KH, KW) -> (KH*KW, Cout, Cin): one (Cout, Cin) matrix per tap.
    w_taps = weight.astype(jnp.float32).transpose(2, 3, 0, 1).reshape(kh * kw, cout, cin)

    # Validity mask over extended columns (computed once on host side of the call).
    col = jnp.arange(lx, dtype=jnp.int32) % wp
    valid_mask = (col < ow).astype(jnp.float32).reshape(1, lx)

    # ---- Phase 1: conv (fused im2col) + per-image per-channel sum / sumsq -----
    kernel1 = functools.partial(_conv_stats_kernel, kh=kh, kw=kw, wp=wp,
                                lx=lx, stride=stride, dilation=dilation)
    y_ext, sums, sumsqs = pl.pallas_call(
        kernel1,
        grid=(n,),
        in_specs=[
            pl.BlockSpec((1, cin, lpad), lambda i: (i, 0, 0)),        # pipelined
            pl.BlockSpec((kh * kw, cout, cin), lambda i: (0, 0, 0)),  # resident
            pl.BlockSpec((1, lx), lambda i: (0, 0)),                  # resident
        ],
        out_specs=[
            pl.BlockSpec((1, cout, lx), lambda i: (i, 0, 0)),
            pl.BlockSpec((1, cout, 1), lambda i: (i, 0, 0)),
            pl.BlockSpec((1, cout, 1), lambda i: (i, 0, 0)),
        ],
        out_shape=(
            jax.ShapeDtypeStruct((n, cout, lx), jnp.float32),
            jax.ShapeDtypeStruct((n, cout, 1), jnp.float32),
            jax.ShapeDtypeStruct((n, cout, 1), jnp.float32),
        ),
        compiler_params=pltpu.CompilerParams(dimension_semantics=("parallel",)),
        cost_estimate=pl.CostEstimate(
            flops=n * (2 * kh * kw * cin * cout * lx + 6 * cout * lx),
            transcendentals=0,
            bytes_accessed=4 * (n * cin * lpad + kh * kw * cout * cin + lx
                                + n * cout * (lx + 2))),
    )(x_flat, w_taps, valid_mask)

    # Fold BN (training-mode batch stats, biased variance, like PyTorch) into a
    # single per-channel scale/shift.  Tiny (Cout,) math -> plain JAX.
    m_valid = float(n * oh * ow)
    g = gamma.astype(jnp.float32)
    b = beta.astype(jnp.float32)
    mean = jnp.sum(sums[:, :, 0], axis=0) / m_valid
    var = jnp.maximum(jnp.sum(sumsqs[:, :, 0], axis=0) / m_valid - mean * mean, 0.0)
    inv_std = lax.rsqrt(var + BN_EPS)
    scale = (g * inv_std).reshape(cout, 1, 1)
    shift = (b - mean * g * inv_std).reshape(cout, 1, 1)

    # ---- Phase 2: elementwise y*scale + shift, ReLU, store straight to NCHW ---
    y4 = y_ext.reshape(n, cout, oh, wp)
    kernel2 = functools.partial(_bn_relu_kernel, ow=ow)
    out = pl.pallas_call(
        kernel2,
        grid=(n,),
        in_specs=[
            pl.BlockSpec((1, cout, oh, wp), lambda i: (i, 0, 0, 0)),
            pl.BlockSpec((cout, 1, 1), lambda i: (0, 0, 0)),
            pl.BlockSpec((cout, 1, 1), lambda i: (0, 0, 0)),
        ],
        out_specs=pl.BlockSpec((1, cout, oh, ow), lambda i: (i, 0, 0, 0)),
        out_shape=jax.ShapeDtypeStruct((n, cout, oh, ow), jnp.float32),
        compiler_params=pltpu.CompilerParams(dimension_semantics=("parallel",)),
        cost_estimate=pl.CostEstimate(
            flops=3 * n * cout * oh * ow,
            transcendentals=0,
            bytes_accessed=4 * (n * cout * oh * (wp + ow) + 2 * cout)),
    )(y4, scale, shift)

    return out


def _reference(x_nchw, weight, gamma, beta, *, stride, padding, dilation):
    """Pure-JAX reference matching PyTorch Conv2d + BatchNorm2d(train) + ReLU."""
    y = lax.conv_general_dilated(
        x_nchw, weight,
        window_strides=(stride, stride),
        padding=[(padding, padding), (padding, padding)],
        rhs_dilation=(dilation, dilation),
        dimension_numbers=("NCHW", "OIHW", "NCHW"))
    mean = jnp.mean(y, axis=(0, 2, 3), keepdims=True)
    var = jnp.mean((y - mean) ** 2, axis=(0, 2, 3), keepdims=True)
    y = (y - mean) * lax.rsqrt(var + BN_EPS)
    y = y * gamma.reshape(1, -1, 1, 1) + beta.reshape(1, -1, 1, 1)
    return jnp.maximum(y, 0.0)


if __name__ == "__main__":
    # Module config: conv_bn_relu(in_channels=4, out_channels=8, kernel_size=3,
    #                             stride=1, padding=1, dilation=1, bias=False)
    N, CIN, H, W = 2, 4, 16, 16
    COUT, KSIZE = 8, 3
    STRIDE, PADDING, DILATION = 1, 1, 1

    key = jax.random.PRNGKey(0)
    kx, kw_, kg, kb = jax.random.split(key, 4)
    x = jax.random.normal(kx, (N, CIN, H, W), dtype=jnp.float32)
    fan_in = CIN * KSIZE * KSIZE
    bound = 1.0 / (fan_in ** 0.5)
    weight = jax.random.uniform(kw_, (COUT, CIN, KSIZE, KSIZE),
                                dtype=jnp.float32, minval=-bound, maxval=bound)
    # BN affine params (gamma=1, beta=0 at init; perturbed to exercise the fold).
    gamma = 1.0 + 0.1 * jax.random.normal(kg, (COUT,), dtype=jnp.float32)
    beta = 0.1 * jax.random.normal(kb, (COUT,), dtype=jnp.float32)

    out = conv_bn_relu(x, weight, gamma, beta,
                       stride=STRIDE, padding=PADDING, dilation=DILATION)
    out = jax.block_until_ready(out)

    ref = _reference(x, weight, gamma, beta,
                     stride=STRIDE, padding=PADDING, dilation=DILATION)
    ref = jax.block_until_ready(ref)

    assert out.shape == (N, COUT, H, W), out.shape
    max_err = float(jnp.max(jnp.abs(out - ref)))
    assert jnp.allclose(out, ref, atol=1e-4, rtol=1e-4), max_err
    print("KERNEL_OK")
</pallas_src>

<mosaic_0001>
module attributes {stable_mosaic.version = 11 : i64} {
  func.func @_conv_stats_kernel(%arg0: i32, %arg1: memref<1x4x326xf32, #tpu.memory_space<vmem>>, %arg2: memref<9x8x4xf32, #tpu.memory_space<vmem>>, %arg3: memref<1x288xf32, #tpu.memory_space<vmem>>, %arg4: memref<1x8x288xf32, #tpu.memory_space<vmem>>, %arg5: memref<1x8x1xf32, #tpu.memory_space<vmem>>, %arg6: memref<1x8x1xf32, #tpu.memory_space<vmem>>) attributes {dimension_semantics = [#tpu.dimension_semantics<parallel>], iteration_bounds = array<i64: 2>, scalar_prefetch = 0 : i64, scratch_operands = 0 : i64, tpu.core_type = #tpu.core_type<tc>, window_params = [{transform_indices = @transform_0, window_bounds = array<i64: 1, 4, 326>}, {pipeline_mode = #tpu.pipeline_mode<synchronous>, transform_indices = @transform_1, window_bounds = array<i64: 9, 8, 4>}, {pipeline_mode = #tpu.pipeline_mode<synchronous>, transform_indices = @transform_2, window_bounds = array<i64: 1, 288>}, {transform_indices = @transform_3, window_bounds = array<i64: 1, 8, 288>}, {transform_indices = @transform_4, window_bounds = array<i64: 1, 8, 1>}, {transform_indices = @transform_5, window_bounds = array<i64: 1, 8, 1>}]} {
    %cst = arith.constant 0.000000e+00 : f32
    %0 = vector.broadcast %cst : f32 to vector<8x288xf32>
    %c0 = arith.constant 0 : index
    %c0_0 = arith.constant 0 : index
    %c0_1 = arith.constant 0 : index
    %1 = vector.load %arg1[%c0, %c0_0, %c0_1] : memref<1x4x326xf32, #tpu.memory_space<vmem>>, vector<1x4x288xf32>
    %2 = vector.shape_cast %1 : vector<1x4x288xf32> to vector<4x288xf32>
    %c0_2 = arith.constant 0 : index
    %c0_3 = arith.constant 0 : index
    %c0_4 = arith.constant 0 : index
    %3 = vector.load %arg2[%c0_2, %c0_3, %c0_4] : memref<9x8x4xf32, #tpu.memory_space<vmem>>, vector<1x8x4xf32>
    %4 = vector.shape_cast %3 : vector<1x8x4xf32> to vector<8x4xf32>
    %cst_5 = arith.constant dense<0.000000e+00> : vector<8x288xf32>
    %5 = tpu.matmul %4, %2, %cst_5 {dimension_numbers = #tpu.dot_dimension_numbers<[1], [0], [0], [1], [0, 0, 1, 1], [], []>} : vector<8x4xf32>, vector<4x288xf32>, vector<8x288xf32> -> vector<8x288xf32>
    %6 = arith.addf %0, %5 : vector<8x288xf32>
    %c0_6 = arith.constant 0 : index
    %c0_7 = arith.constant 0 : index
    %c1 = arith.constant 1 : index
    %7 = vector.load %arg1[%c0_6, %c0_7, %c1] : memref<1x4x326xf32, #tpu.memory_space<vmem>>, vector<1x4x288xf32>
    %8 = vector.shape_cast %7 : vector<1x4x288xf32> to vector<4x288xf32>
    %c1_8 = arith.constant 1 : index
    %c0_9 = arith.constant 0 : index
    %c0_10 = arith.constant 0 : index
    %9 = vector.load %arg2[%c1_8, %c0_9, %c0_10] : memref<9x8x4xf32, #tpu.memory_space<vmem>>, vector<1x8x4xf32>
    %10 = vector.shape_cast %9 : vector<1x8x4xf32> to vector<8x4xf32>
    %cst_11 = arith.constant dense<0.000000e+00> : vector<8x288xf32>
    %11 = tpu.matmul %10, %8, %cst_11 {dimension_numbers = #tpu.dot_dimension_numbers<[1], [0], [0], [1], [0, 0, 1, 1], [], []>} : vector<8x4xf32>, vector<4x288xf32>, vector<8x288xf32> -> vector<8x288xf32>
    %12 = arith.addf %6, %11 : vector<8x288xf32>
    %c0_12 = arith.constant 0 : index
    %c0_13 = arith.constant 0 : index
    %c2 = arith.constant 2 : index
    %13 = vector.load %arg1[%c0_12, %c0_13, %c2] : memref<1x4x326xf32, #tpu.memory_space<vmem>>, vector<1x4x288xf32>
    %14 = vector.shape_cast %13 : vector<1x4x288xf32> to vector<4x288xf32>
    %c2_14 = arith.constant 2 : index
    %c0_15 = arith.constant 0 : index
    %c0_16 = arith.constant 0 : index
    %15 = vector.load %arg2[%c2_14, %c0_15, %c0_16] : memref<9x8x4xf32, #tpu.memory_space<vmem>>, vector<1x8x4xf32>
    %16 = vector.shape_cast %15 : vector<1x8x4xf32> to vector<8x4xf32>
    %cst_17 = arith.constant dense<0.000000e+00> : vector<8x288xf32>
    %17 = tpu.matmul %16, %14, %cst_17 {dimension_numbers = #tpu.dot_dimension_numbers<[1], [0], [0], [1], [0, 0, 1, 1], [], []>} : vector<8x4xf32>, vector<4x288xf32>, vector<8x288xf32> -> vector<8x288xf32>
    %18 = arith.addf %12, %17 : vector<8x288xf32>
    %c0_18 = arith.constant 0 : index
    %c0_19 = arith.constant 0 : index
    %c18 = arith.constant 18 : index
    %19 = vector.load %arg1[%c0_18, %c0_19, %c18] : memref<1x4x326xf32, #tpu.memory_space<vmem>>, vector<1x4x288xf32>
    %20 = vector.shape_cast %19 : vector<1x4x288xf32> to vector<4x288xf32>
    %c3 = arith.constant 3 : index
    %c0_20 = arith.constant 0 : index
    %c0_21 = arith.constant 0 : index
    %21 = vector.load %arg2[%c3, %c0_20, %c0_21] : memref<9x8x4xf32, #tpu.memory_space<vmem>>, vector<1x8x4xf32>
    %22 = vector.shape_cast %21 : vector<1x8x4xf32> to vector<8x4xf32>
    %cst_22 = arith.constant dense<0.000000e+00> : vector<8x288xf32>
    %23 = tpu.matmul %22, %20, %cst_22 {dimension_numbers = #tpu.dot_dimension_numbers<[1], [0], [0], [1], [0, 0, 1, 1], [], []>} : vector<8x4xf32>, vector<4x288xf32>, vector<8x288xf32> -> vector<8x288xf32>
    %24 = arith.addf %18, %23 : vector<8x288xf32>
    %c0_23 = arith.constant 0 : index
    %c0_24 = arith.constant 0 : index
    %c19 = arith.constant 19 : index
    %25 = vector.load %arg1[%c0_23, %c0_24, %c19] : memref<1x4x326xf32, #tpu.memory_space<vmem>>, vector<1x4x288xf32>
    %26 = vector.shape_cast %25 : vector<1x4x288xf32> to vector<4x288xf32>
    %c4 = arith.constant 4 : index
    %c0_25 = arith.constant 0 : index
    %c0_26 = arith.constant 0 : index
    %27 = vector.load %arg2[%c4, %c0_25, %c0_26] : memref<9x8x4xf32, #tpu.memory_space<vmem>>, vector<1x8x4xf32>
    %28 = vector.shape_cast %27 : vector<1x8x4xf32> to vector<8x4xf32>
    %cst_27 = arith.constant dense<0.000000e+00> : vector<8x288xf32>
    %29 = tpu.matmul %28, %26, %cst_27 {dimension_numbers = #tpu.dot_dimension_numbers<[1], [0], [0], [1], [0, 0, 1, 1], [], []>} : vector<8x4xf32>, vector<4x288xf32>, vector<8x288xf32> -> vector<8x288xf32>
    %30 = arith.addf %24, %29 : vector<8x288xf32>
    %c0_28 = arith.constant 0 : index
    %c0_29 = arith.constant 0 : index
    %c20 = arith.constant 20 : index
    %31 = vector.load %arg1[%c0_28, %c0_29, %c20] : memref<1x4x326xf32, #tpu.memory_space<vmem>>, vector<1x4x288xf32>
    %32 = vector.shape_cast %31 : vector<1x4x288xf32> to vector<4x288xf32>
    %c5 = arith.constant 5 : index
    %c0_30 = arith.constant 0 : index
    %c0_31 = arith.constant 0 : index
    %33 = vector.load %arg2[%c5, %c0_30, %c0_31] : memref<9x8x4xf32, #tpu.memory_space<vmem>>, vector<1x8x4xf32>
    %34 = vector.shape_cast %33 : vector<1x8x4xf32> to vector<8x4xf32>
    %cst_32 = arith.constant dense<0.000000e+00> : vector<8x288xf32>
    %35 = tpu.matmul %34, %32, %cst_32 {dimension_numbers = #tpu.dot_dimension_numbers<[1], [0], [0], [1], [0, 0, 1, 1], [], []>} : vector<8x4xf32>, vector<4x288xf32>, vector<8x288xf32> -> vector<8x288xf32>
    %36 = arith.addf %30, %35 : vector<8x288xf32>
    %c0_33 = arith.constant 0 : index
    %c0_34 = arith.constant 0 : index
    %c36 = arith.constant 36 : index
    %37 = vector.load %arg1[%c0_33, %c0_34, %c36] : memref<1x4x326xf32, #tpu.memory_space<vmem>>, vector<1x4x288xf32>
    %38 = vector.shape_cast %37 : vector<1x4x288xf32> to vector<4x288xf32>
    %c6 = arith.constant 6 : index
    %c0_35 = arith.constant 0 : index
    %c0_36 = arith.constant 0 : index
    %39 = vector.load %arg2[%c6, %c0_35, %c0_36] : memref<9x8x4xf32, #tpu.memory_space<vmem>>, vector<1x8x4xf32>
    %40 = vector.shape_cast %39 : vector<1x8x4xf32> to vector<8x4xf32>
    %cst_37 = arith.constant dense<0.000000e+00> : vector<8x288xf32>
    %41 = tpu.matmul %40, %38, %cst_37 {dimension_numbers = #tpu.dot_dimension_numbers<[1], [0], [0], [1], [0, 0, 1, 1], [], []>} : vector<8x4xf32>, vector<4x288xf32>, vector<8x288xf32> -> vector<8x288xf32>
    %42 = arith.addf %36, %41 : vector<8x288xf32>
    %c0_38 = arith.constant 0 : index
    %c0_39 = arith.constant 0 : index
    %c37 = arith.constant 37 : index
    %43 = vector.load %arg1[%c0_38, %c0_39, %c37] : memref<1x4x326xf32, #tpu.memory_space<vmem>>, vector<1x4x288xf32>
    %44 = vector.shape_cast %43 : vector<1x4x288xf32> to vector<4x288xf32>
    %c7 = arith.constant 7 : index
    %c0_40 = arith.constant 0 : index
    %c0_41 = arith.constant 0 : index
    %45 = vector.load %arg2[%c7, %c0_40, %c0_41] : memref<9x8x4xf32, #tpu.memory_space<vmem>>, vector<1x8x4xf32>
    %46 = vector.shape_cast %45 : vector<1x8x4xf32> to vector<8x4xf32>
    %cst_42 = arith.constant dense<0.000000e+00> : vector<8x288xf32>
    %47 = tpu.matmul %46, %44, %cst_42 {dimension_numbers = #tpu.dot_dimension_numbers<[1], [0], [0], [1], [0, 0, 1, 1], [], []>} : vector<8x4xf32>, vector<4x288xf32>, vector<8x288xf32> -> vector<8x288xf32>
    %48 = arith.addf %42, %47 : vector<8x288xf32>
    %c0_43 = arith.constant 0 : index
    %c0_44 = arith.constant 0 : index
    %c38 = arith.constant 38 : index
    %49 = vector.load %arg1[%c0_43, %c0_44, %c38] : memref<1x4x326xf32, #tpu.memory_space<vmem>>, vector<1x4x288xf32>
    %50 = vector.shape_cast %49 : vector<1x4x288xf32> to vector<4x288xf32>
    %c8 = arith.constant 8 : index
    %c0_45 = arith.constant 0 : index
    %c0_46 = arith.constant 0 : index
    %51 = vector.load %arg2[%c8, %c0_45, %c0_46] : memref<9x8x4xf32, #tpu.memory_space<vmem>>, vector<1x8x4xf32>
    %52 = vector.shape_cast %51 : vector<1x8x4xf32> to vector<8x4xf32>
    %cst_47 = arith.constant dense<0.000000e+00> : vector<8x288xf32>
    %53 = tpu.matmul %52, %50, %cst_47 {dimension_numbers = #tpu.dot_dimension_numbers<[1], [0], [0], [1], [0, 0, 1, 1], [], []>} : vector<8x4xf32>, vector<4x288xf32>, vector<8x288xf32> -> vector<8x288xf32>
    %54 = arith.addf %48, %53 : vector<8x288xf32>
    %c0_48 = arith.constant 0 : index
    %c0_49 = arith.constant 0 : index
    %c0_50 = arith.constant 0 : index
    %55 = vector.load %arg4[%c0_48, %c0_49, %c0_50] : memref<1x8x288xf32, #tpu.memory_space<vmem>>, vector<1x8x288xf32>
    %56 = vector.shape_cast %55 : vector<1x8x288xf32> to vector<8x288xf32>
    %57 = vector.shape_cast %54 : vector<8x288xf32> to vector<1x8x288xf32>
    tpu.vector_store %arg4[%c0_48, %c0_49, %c0_50], %57 {strides = array<i32>} : memref<1x8x288xf32, #tpu.memory_space<vmem>>, vector<1x8x288xf32>,
    %c0_51 = arith.constant 0 : index
    %c0_52 = arith.constant 0 : index
    %58 = vector.load %arg3[%c0_51, %c0_52] : memref<1x288xf32, #tpu.memory_space<vmem>>, vector<1x288xf32>
    %59 = vector.broadcast %58 : vector<1x288xf32> to vector<8x288xf32>
    %60 = arith.mulf %54, %59 : vector<8x288xf32>
    %cst_53 = arith.constant dense<0.000000e+00> : vector<8xf32>
    %61 = vector.multi_reduction <add>, %60, %cst_53 [1] : vector<8x288xf32> to vector<8xf32>
    %62 = vector.shape_cast %61 : vector<8xf32> to vector<8x1xf32>
    %c0_54 = arith.constant 0 : index
    %c0_55 = arith.constant 0 : index
    %c0_56 = arith.constant 0 : index
    %63 = vector.load %arg5[%c0_54, %c0_55, %c0_56] : memref<1x8x1xf32, #tpu.memory_space<vmem>>, vector<1x8x1xf32>
    %64 = vector.shape_cast %63 : vector<1x8x1xf32> to vector<8x1xf32>
    %65 = vector.shape_cast %62 : vector<8x1xf32> to vector<1x8x1xf32>
    tpu.vector_store %arg5[%c0_54, %c0_55, %c0_56], %65 {strides = array<i32>} : memref<1x8x1xf32, #tpu.memory_space<vmem>>, vector<1x8x1xf32>,
    %66 = arith.mulf %54, %54 : vector<8x288xf32>
    %67 = vector.broadcast %58 : vector<1x288xf32> to vector<8x288xf32>
    %68 = arith.mulf %66, %67 : vector<8x288xf32>
    %cst_57 = arith.constant dense<0.000000e+00> : vector<8xf32>
    %69 = vector.multi_reduction <add>, %68, %cst_57 [1] : vector<8x288xf32> to vector<8xf32>
    %70 = vector.shape_cast %69 : vector<8xf32> to vector<8x1xf32>
    %c0_58 = arith.constant 0 : index
    %c0_59 = arith.constant 0 : index
    %c0_60 = arith.constant 0 : index
    %71 = vector.load %arg6[%c0_58, %c0_59, %c0_60] : memref<1x8x1xf32, #tpu.memory_space<vmem>>, vector<1x8x1xf32>
    %72 = vector.shape_cast %71 : vector<1x8x1xf32> to vector<8x1xf32>
    %73 = vector.shape_cast %70 : vector<8x1xf32> to vector<1x8x1xf32>
    tpu.vector_store %arg6[%c0_58, %c0_59, %c0_60], %73 {strides = array<i32>} : memref<1x8x1xf32, #tpu.memory_space<vmem>>, vector<1x8x1xf32>,
    return
  }
  func.func @transform_0(%arg0: i32) -> (i32, i32, i32) {
    %c0_i32 = arith.constant 0 : i32
    %c0_i32_0 = arith.constant 0 : i32
    %c0_i32_1 = arith.constant 0 : i32
    return %arg0, %c0_i32, %c0_i32_0 : i32, i32, i32
  }
  func.func @transform_1(%arg0: i32) -> (i32, i32, i32) {
    %c0_i32 = arith.constant 0 : i32
    %c0_i32_0 = arith.constant 0 : i32
    %c0_i32_1 = arith.constant 0 : i32
    %c0_i32_2 = arith.constant 0 : i32
    return %c0_i32, %c0_i32_0, %c0_i32_1 : i32, i32, i32
  }
  func.func @transform_2(%arg0: i32) -> (i32, i32) {
    %c0_i32 = arith.constant 0 : i32
    %c0_i32_0 = arith.constant 0 : i32
    %c0_i32_1 = arith.constant 0 : i32
    return %c0_i32, %c0_i32_0 : i32, i32
  }
  func.func @transform_3(%arg0: i32) -> (i32, i32, i32) {
    %c0_i32 = arith.constant 0 : i32
    %c0_i32_0 = arith.constant 0 : i32
    %c0_i32_1 = arith.constant 0 : i32
    return %arg0, %c0_i32, %c0_i32_0 : i32, i32, i32
  }
  func.func @transform_4(%arg0: i32) -> (i32, i32, i32) {
    %c0_i32 = arith.constant 0 : i32
    %c0_i32_0 = arith.constant 0 : i32
    %c0_i32_1 = arith.constant 0 : i32
    return %arg0, %c0_i32, %c0_i32_0 : i32, i32, i32
  }
  func.func @transform_5(%arg0: i32) -> (i32, i32, i32) {
    %c0_i32 = arith.constant 0 : i32
    %c0_i32_0 = arith.constant 0 : i32
    %c0_i32_1 = arith.constant 0 : i32
    return %arg0, %c0_i32, %c0_i32_0 : i32, i32, i32
  }
}

module attributes {stable_mosaic.version = 11 : i64} {
  func.func @_bn_relu_kernel(%arg0: i32, %arg1: memref<1x8x16x18xf32, #tpu.memory_space<vmem>>, %arg2: memref<8x1x1xf32, #tpu.memory_space<vmem>>, %arg3: memref<8x1x1xf32, #tpu.memory_space<vmem>>, %arg4: memref<1x8x16x16xf32, #tpu.memory_space<vmem>>) attributes {dimension_semantics = [#tpu.dimension_semantics<parallel>], iteration_bounds = array<i64: 2>, scalar_prefetch = 0 : i64, scratch_operands = 0 : i64, tpu.core_type = #tpu.core_type<tc>, window_params = [{transform_indices = @transform_0, window_bounds = array<i64: 1, 8, 16, 18>}, {pipeline_mode = #tpu.pipeline_mode<synchronous>, transform_indices = @transform_1, window_bounds = array<i64: 8, 1, 1>}, {pipeline_mode = #tpu.pipeline_mode<synchronous>, transform_indices = @transform_2, window_bounds = array<i64: 8, 1, 1>}, {transform_indices = @transform_3, window_bounds = array<i64: 1, 8, 16, 16>}]} {
    %c0 = arith.constant 0 : index
    %c0_0 = arith.constant 0 : index
    %c0_1 = arith.constant 0 : index
    %c0_2 = arith.constant 0 : index
    %0 = vector.load %arg1[%c0, %c0_0, %c0_1, %c0_2] : memref<1x8x16x18xf32, #tpu.memory_space<vmem>>, vector<1x8x16x18xf32>
    %1 = vector.extract_strided_slice %0 {offsets = [0, 0, 0, 0], sizes = [1, 8, 16, 16], strides = [1, 1, 1, 1]} : vector<1x8x16x18xf32> to vector<1x8x16x16xf32>
    %c0_3 = arith.constant 0 : index
    %c0_4 = arith.constant 0 : index
    %c0_5 = arith.constant 0 : index
    %2 = vector.load %arg2[%c0_3, %c0_4, %c0_5] : memref<8x1x1xf32, #tpu.memory_space<vmem>>, vector<8x1x1xf32>
    %3 = vector.shape_cast %2 : vector<8x1x1xf32> to vector<1x8x1x1xf32>
    %4 = vector.broadcast %3 : vector<1x8x1x1xf32> to vector<1x8x16x16xf32>
    %5 = arith.mulf %1, %4 : vector<1x8x16x16xf32>
    %c0_6 = arith.constant 0 : index
    %c0_7 = arith.constant 0 : index
    %c0_8 = arith.constant 0 : index
    %6 = vector.load %arg3[%c0_6, %c0_7, %c0_8] : memref<8x1x1xf32, #tpu.memory_space<vmem>>, vector<8x1x1xf32>
    %7 = vector.shape_cast %6 : vector<8x1x1xf32> to vector<1x8x1x1xf32>
    %8 = vector.broadcast %7 : vector<1x8x1x1xf32> to vector<1x8x16x16xf32>
    %9 = arith.addf %5, %8 : vector<1x8x16x16xf32>
    %cst = arith.constant 0.000000e+00 : f32
    %10 = vector.broadcast %cst : f32 to vector<1x8x16x16xf32>
    %11 = arith.maximumf %9, %10 : vector<1x8x16x16xf32>
    %c0_9 = arith.constant 0 : index
    %c0_10 = arith.constant 0 : index
    %c0_11 = arith.constant 0 : index
    %c0_12 = arith.constant 0 : index
    %12 = vector.load %arg4[%c0_9, %c0_10, %c0_11, %c0_12] : memref<1x8x16x16xf32, #tpu.memory_space<vmem>>, vector<1x8x16x16xf32>
    tpu.vector_store %arg4[%c0_9, %c0_10, %c0_11, %c0_12], %11 {strides = array<i32>} : memref<1x8x16x16xf32, #tpu.memory_space<vmem>>, vector<1x8x16x16xf32>,
    return
  }
  func.func @transform_0(%arg0: i32) -> (i32, i32, i32, i32) {
    %c0_i32 = arith.constant 0 : i32
    %c0_i32_0 = arith.constant 0 : i32
    %c0_i32_1 = arith.constant 0 : i32
    %c0_i32_2 = arith.constant 0 : i32
    return %arg0, %c0_i32, %c0_i32_0, %c0_i32_1 : i32, i32, i32, i32
  }
  func.func @transform_1(%arg0: i32) -> (i32, i32, i32) {
    %c0_i32 = arith.constant 0 : i32
    %c0_i32_0 = arith.constant 0 : i32
    %c0_i32_1 = arith.constant 0 : i32
    %c0_i32_2 = arith.constant 0 : i32
    return %c0_i32, %c0_i32_0, %c0_i32_1 : i32, i32, i32
  }
  func.func @transform_2(%arg0: i32) -> (i32, i32, i32) {
    %c0_i32 = arith.constant 0 : i32
    %c0_i32_0 = arith.constant 0 : i32
    %c0_i32_1 = arith.constant 0 : i32
    %c0_i32_2 = arith.constant 0 : i32
    return %c0_i32, %c0_i32_0, %c0_i32_1 : i32, i32, i32
  }
  func.func @transform_3(%arg0: i32) -> (i32, i32, i32, i32) {
    %c0_i32 = arith.constant 0 : i32
    %c0_i32_0 = arith.constant 0 : i32
    %c0_i32_1 = arith.constant 0 : i32
    %c0_i32_2 = arith.constant 0 : i32
    return %arg0, %c0_i32, %c0_i32_0, %c0_i32_1 : i32, i32, i32, i32
  }
}

</mosaic_0001>

<bundles_post_ra>
// kernel: conv_bn_relu.3
= control target key start
LH: loop header
LB: loop body
LE: loop exit
PB: predicated region body
PF: predicated region fallthrough
CT: control target
= control target key end

     0   :  { %8 = vsyncpa [#allocation3], 0  ;;  %s864_s0 = inlined_call_operand.vmem [shape: f32[2,8,16,18], index: 0, kind: input, shape index: {}]   ;;  %s865_s1 = inlined_call_operand.vmem [shape: f32[8,1,1], index: 1, kind: input, shape index: {}]   ;;  %s866_s2 = inlined_call_operand.vmem [shape: f32[8,1,1], index: 2, kind: input, shape index: {}]   ;;  %s867_s3 = inlined_call_operand.hbm [shape: f32[2,8,16,16], index: 3, kind: output, shape index: {}]  }
   0x1   :  { %10 = vsyncpa [#allocation3 + $0x1], 0  ;;  %s648_s12 = smov 0   ;;  %s650_s13 = smov 0  }
   0x2   :  { %s652_s14 = smov 0   ;;  %s654_s15 = smov 0  }
   0x3 LB: > { %s669_s16 = sadd.s32 4294967295, %s622_s15   ;;  %s486_s17 = sadd.s32 4294967294, %s622_s15   ;;  %s622_s15 = sphi %s654_s15, %s873_s15   ;;  %s618_s14 = sphi %s652_s14, %s872_s14   ;;  %s614_s13 = sphi %s650_s13, %s871_s13   ;;  %s610_s12 = sphi %s648_s12, %s870_s12  }
   0x4   : > { %s673_s18 = sadd.s32 1, %s622_s15   ;;  %s91_s19 = sadd.s32 1, %s618_s14 }
   0x5   : > { %s88_s20 = ssub.s32 %s622_s15, %s673_s18  ;;  %p101_p0 = scmp.ne.s32.totalorder %s618_s14, %s614_s13 }
   0x6   : > { %p89_p1 = scmp.eq.s32.totalorder %s88_s20, 0  ;;  %p102_p2 = scmp.eq.s32.totalorder %s669_s16, 1 }
   0x7   : > { %p107_p3 = scmp.ne.s32.totalorder %s614_s13, %s610_s12  ;;  %p108_p4 = scmp.eq.s32.totalorder %s486_s17, 1 }
   0x8   : > { %s684_s21 = scalar_select %p89_p1, %s618_s14, %s91_s19  }
   0x9   : > { %p686_p5 = por %p102_p2, %p101_p0  ;;  %p690_p6 = por %p108_p4, %p107_p3 }
   0xa   : > { %p489_p7 = scmp.ge.s32.totalorder %s622_s15, 1  ;;  %p140_p8 = scmp.lt.s32.totalorder %s622_s15, 3 }
   0xc   : > { %p141_p9 = pnand %p489_p7, %p140_p8 }
   0xd   : > { %v495_v0 = vld [vmem:[%s865_s1 + $0x2] ss:$0 sm:$0xff] (!%p141_p9)  ;;  %v493_v1 = vld [vmem:[%s865_s1] ss:$0 sm:$0xff] (!%p141_p9)  ;;  %v624_v2 = vmov (!%p141_p9), 0   ;;  %p164_p10 = scmp.lt.s32.totalorder (!%p141_p9), %s669_s16, 1 }
   0xe   : > { %144 = sbr.rel (%p141_p9) target bundleno = 191 (0xbf), region = 32  ;;  %559 = vset.pattern.permute.xlu1 (!%p141_p9), %v624_v2  ;;  %558 = vset.pattern.permute.xlu0 (!%p141_p9), %v624_v2  ;;  %v496_v3 = vld [vmem:[%s865_s1 + $0x3] ss:$0 sm:$0xff] (!%p141_p9)  ;;  %v494_v4 = vld [vmem:[%s865_s1 + $0x1] ss:$0 sm:$0xff] (!%p141_p9)  ;;  %s161_s25 = sand.u32 (!%p141_p9), 1, %s614_s13  }
   0xf   : > { %242 = vperm.xlu1 (!%p141_p9), %559, %v495_v0   ;;  %234 = vperm.xlu0 (!%p141_p9), %558, %v493_v1   ;;  %v498_v5 = vld [vmem:[%s865_s1 + $0x5] ss:$0 sm:$0xff] (!%p141_p9)  ;;  %v497_v6 = vld [vmem:[%s865_s1 + $0x4] ss:$0 sm:$0xff] (!%p141_p9)  ;;  %v500_v7 = vld [vmem:[%s865_s1 + $0x7] ss:$0 sm:$0xff] (!%p141_p9) }
  0x10   : > { %v499_v8 = vld [vmem:[%s865_s1 + $0x6] ss:$0 sm:$0xff] (!%p141_p9)  ;;  %v502_v9 = vld [vmem:[%s866_s2 + $0x1] ss:$0 sm:$0xff] (!%p141_p9)  ;;  %v501_v10 = vld [vmem:[%s866_s2] ss:$0 sm:$0xff] (!%p141_p9) }
  0x11   : > { %v504_v11 = vld [vmem:[%s866_s2 + $0x3] ss:$0 sm:$0xff] (!%p141_p9)  ;;  %v503_v12 = vld [vmem:[%s866_s2 + $0x2] ss:$0 sm:$0xff] (!%p141_p9)  ;;  %v506_v13 = vld [vmem:[%s866_s2 + $0x5] ss:$0 sm:$0xff] (!%p141_p9) }
  0x12   : > { %v505_v14 = vld [vmem:[%s866_s2 + $0x4] ss:$0 sm:$0xff] (!%p141_p9)  ;;  %v508_v15 = vld [vmem:[%s866_s2 + $0x7] ss:$0 sm:$0xff] (!%p141_p9)  ;;  %v507_v16 = vld [vmem:[%s866_s2 + $0x6] ss:$0 sm:$0xff] (!%p141_p9) }
  0x13   : > { %246 = vperm.xlu1 (!%p141_p9), %559, %v496_v3   ;;  %238 = vperm.xlu0 (!%p141_p9), %558, %v494_v4   ;;  %s490_s26 = sshll.u32 (!%p141_p9), %s161_s25, 7  ;;  %vm393_vm0 = vcmask (!%p141_p9), 130048   ;;  %s515_s28 = sshll.u32 (!%p141_p9), %s669_s16, 11 }
  0x14   : > { %s770_s27 = scalar_lea.vmem (!%p141_p9), [#allocation2], %s490_s26  ;;  %s809_s4 = scalar_lea.hbm (!%p141_p9), %s867_s3, %s515_s28 }
  0x15   : > { %s165_s11 = scalar_select %p164_p10, %s669_s16, 1 }
  0x16   : > { %s424_s29 = sshll.u32 %s770_s27, 4  ;;  %s823_s5 = scalar_lea.sflag [#allocation3], %s161_s25  ;;  %s811_s29 = int_to_ptr.vmem [resolvable:$true] %s424_s29 }
  0x17   : > { %254 = vperm.xlu1 %559, %v498_v5   ;;  %250 = vperm.xlu0 %558, %v497_v6   ;;  %s514_s17 = sshll.u32 %s165_s11, 7  ;;  %s560_s6 = scalar_lea.vmem %s811_s29, 2048 }
  0x18   : > { %s749_s24 = scalar_lea.vmem %s864_s0, %s514_s17  ;;  %p561_p11 = scmp.ne.s32.totalorder %s811_s29, %s560_s6 }
  0x19   : > { %v169_v23 = vld [vmem:[%s749_s24] sm:$0xff]  ;;  %v170_v24 = vld [vmem:[%s749_s24 + $0x8] sm:$0xff]  ;;  %v171_v25 = vld [vmem:[%s749_s24 + $0x10] sm:$0xff]  ;;  %s625_s7 = smov [#allocation2]  }
  0x1a   : > { %v172_v26 = vld [vmem:[%s749_s24 + $0x18] sm:$0xff]  ;;  %v173_v29 = vld [vmem:[%s749_s24 + $0x20] sm:$0xff]  ;;  %v174_v30 = vld [vmem:[%s749_s24 + $0x28] sm:$0xff]  ;;  %p562_p12 = pnand %p561_p11, %p686_p5  ;;  %s564_s8 = sshll.u32 %s625_s7, 4  ;;  %s565_s8 = int_to_ptr.vmem [resolvable:$false] %s564_s8 }
  0x1b   : > { %262 = vperm.xlu1 %559, %v500_v7   ;;  %258 = vperm.xlu0 %558, %v499_v8   ;;  %v175_v33 = vld [vmem:[%s749_s24 + $0x30] sm:$0xff]  ;;  %v176_v34 = vld [vmem:[%s749_s24 + $0x38] sm:$0xff]  ;;  %v177_v49 = vld [vmem:[%s749_s24 + $0x40] sm:$0xff]  ;;  %s566_s9 = scalar_lea.vmem %s565_s8, 4096  ;;  %p567_p0 = scmp.lt.s32.totalorder %s811_s29, %s565_s8 }
  0x1c   : > { %v179_v47 = vld [vmem:[%s749_s24 + $0x50] sm:$0xff]  ;;  %v180_v48 = vld [vmem:[%s749_s24 + $0x58] sm:$0xff]  ;;  %v178_v50 = vld [vmem:[%s749_s24 + $0x48] sm:$0xff]  ;;  %p563_p13 = pneg %p562_p12  ;;  %p568_p1 = scmp.lt.s32.totalorder %s566_s9, %s560_s6 }
  0x1d   : > { %v183_v1 = vld [vmem:[%s749_s24 + $0x70] sm:$0xff]  ;;  %v184_v2 = vld [vmem:[%s749_s24 + $0x78] sm:$0xff]  ;;  %v181_v3 = vld [vmem:[%s749_s24 + $0x60] sm:$0xff] }
  0x1e   : > { %v182_v4 = vld [vmem:[%s749_s24 + $0x68] sm:$0xff]  ;;  %p569_p2 = por %p568_p1, %p567_p0 }
  0x1f   : > { %334 = vperm.xlu1 %559, %v502_v9   ;;  %330 = vperm.xlu0 %558, %v501_v10  }
  0x20   : > { %p570_p3 = pnand %p569_p2, %p563_p13 }
  0x23   : > { %342 = vperm.xlu1 %559, %v504_v11   ;;  %338 = vperm.xlu0 %558, %v503_v12  }
  0x27   : > { %350 = vperm.xlu1 %559, %v506_v13   ;;  %346 = vperm.xlu0 %558, %v505_v14  }
  0x2b   : > { %358 = vperm.xlu1 %559, %v508_v15   ;;  %354 = vperm.xlu0 %558, %v507_v16  }
  0x8e   : > { %v243_v17 = vpop.permute.xlu1 %242  ;;  %v235_v18 = vpop.permute.xlu0 %234 }
  0x8f   : > { %v265_v31 = vmul.f32 %v235_v18, %v169_v23  ;;  %v266_v32 = vmul.f32 %v235_v18, %v170_v24  ;;  %v269_v43 = vmul.f32 %v243_v17, %v173_v29  ;;  %v270_v44 = vmul.f32 %v243_v17, %v174_v30 }
  0x92   : > { %v247_v19 = vpop.permute.xlu1 %246  ;;  %v239_v20 = vpop.permute.xlu0 %238 }
  0x93   : > { %v267_v35 = vmul.f32 %v239_v20, %v171_v25  ;;  %v268_v36 = vmul.f32 %v239_v20, %v172_v26  ;;  %v271_v45 = vmul.f32 %v247_v19, %v175_v33  ;;  %v272_v46 = vmul.f32 %v247_v19, %v176_v34 }
  0x96   : > { %v255_v21 = vpop.permute.xlu1 %254  ;;  %v251_v22 = vpop.permute.xlu0 %250 }
  0x97   : > { %v275_v61 = vmul.f32 %v255_v21, %v179_v47  ;;  %v276_v62 = vmul.f32 %v255_v21, %v180_v48  ;;  %v273_v63 = vmul.f32 %v251_v22, %v177_v49  ;;  %v274_v0 = vmul.f32 %v251_v22, %v178_v50 }
  0x9a   : > { %v755_v27 = vpop.permute.xlu1 %262  ;;  %v757_v28 = vpop.permute.xlu0 %258 }
  0x9b   : > { %v279_v15 = vmul.f32 %v755_v27, %v183_v1  ;;  %v280_v16 = vmul.f32 %v755_v27, %v184_v2  ;;  %v277_v17 = vmul.f32 %v757_v28, %v181_v3  ;;  %v278_v18 = vmul.f32 %v757_v28, %v182_v4 }
  0x9e   : > { %v335_v37 = vpop.permute.xlu1 %334  ;;  %v331_v38 = vpop.permute.xlu0 %330 }
  0x9f   : > { %v363_v39 = vadd.f32 %v335_v37, %v267_v35  ;;  %v364_v40 = vadd.f32 %v335_v37, %v268_v36  ;;  %v361_v41 = vadd.f32 %v331_v38, %v265_v31  ;;  %v362_v42 = vadd.f32 %v331_v38, %v266_v32 }
  0xa1   : > { %v379_v51 = vmax.f32 %v363_v39, 0.0  ;;  %v380_v52 = vmax.f32 %v364_v40, 0.0  ;;  %v377_v53 = vmax.f32 %v361_v41, 0.0  ;;  %v378_v54 = vmax.f32 %v362_v42, 0.0 }
  0xa2   : > { %v343_v55 = vpop.permute.xlu1 %342  ;;  %v339_v56 = vpop.permute.xlu0 %338 }
  0xa3   : > { %396 = vst.msk [vmem:[%s770_s27 + $0x10] sm:$0xff] %vm393_vm0, %v379_v51  ;;  %397 = vst.msk [vmem:[%s770_s27 + $0x18] sm:$0xff] %vm393_vm0, %v380_v52  ;;  %v367_v57 = vadd.f32 %v343_v55, %v271_v45  ;;  %v368_v58 = vadd.f32 %v343_v55, %v272_v46  ;;  %v365_v59 = vadd.f32 %v339_v56, %v269_v43 }
  0xa4   : > { %394 = vst.msk [vmem:[%s770_s27] sm:$0xff] %vm393_vm0, %v377_v53  ;;  %395 = vst.msk [vmem:[%s770_s27 + $0x8] sm:$0xff] %vm393_vm0, %v378_v54  ;;  %v366_v60 = vadd.f32 %v339_v56, %v270_v44 }
  0xa5   : > { %v383_v5 = vmax.f32 %v367_v57, 0.0  ;;  %v384_v6 = vmax.f32 %v368_v58, 0.0  ;;  %v381_v7 = vmax.f32 %v365_v59, 0.0 }
  0xa6   : > { %v382_v8 = vmax.f32 %v366_v60, 0.0  ;;  %v351_v9 = vpop.permute.xlu1 %350  ;;  %v347_v10 = vpop.permute.xlu0 %346 }
  0xa7   : > { %400 = vst.msk [vmem:[%s770_s27 + $0x30] sm:$0xff] %vm393_vm0, %v383_v5  ;;  %401 = vst.msk [vmem:[%s770_s27 + $0x38] sm:$0xff] %vm393_vm0, %v384_v6  ;;  %v371_v11 = vadd.f32 %v351_v9, %v275_v61  ;;  %v372_v12 = vadd.f32 %v351_v9, %v276_v62  ;;  %v369_v13 = vadd.f32 %v347_v10, %v273_v63 }
  0xa8   : > { %398 = vst.msk [vmem:[%s770_s27 + $0x20] sm:$0xff] %vm393_vm0, %v381_v7  ;;  %399 = vst.msk [vmem:[%s770_s27 + $0x28] sm:$0xff] %vm393_vm0, %v382_v8  ;;  %v370_v14 = vadd.f32 %v347_v10, %v274_v0 }
  0xa9   : > { %v387_v19 = vmax.f32 %v371_v11, 0.0  ;;  %v388_v20 = vmax.f32 %v372_v12, 0.0  ;;  %v385_v21 = vmax.f32 %v369_v13, 0.0 }
  0xaa   : > { %v386_v22 = vmax.f32 %v370_v14, 0.0  ;;  %v359_v23 = vpop.permute.xlu1 %358  ;;  %v355_v24 = vpop.permute.xlu0 %354 }
  0xab   : > { %404 = vst.msk [vmem:[%s770_s27 + $0x50] sm:$0xff] %vm393_vm0, %v387_v19  ;;  %405 = vst.msk [vmem:[%s770_s27 + $0x58] sm:$0xff] %vm393_vm0, %v388_v20  ;;  %v375_v25 = vadd.f32 %v359_v23, %v279_v15  ;;  %v376_v26 = vadd.f32 %v359_v23, %v280_v16  ;;  %v373_v27 = vadd.f32 %v355_v24, %v277_v17 }
  0xac   : > { %402 = vst.msk [vmem:[%s770_s27 + $0x40] sm:$0xff] %vm393_vm0, %v385_v21  ;;  %403 = vst.msk [vmem:[%s770_s27 + $0x48] sm:$0xff] %vm393_vm0, %v386_v22  ;;  %v374_v28 = vadd.f32 %v355_v24, %v278_v18 }
  0xad   : > { %v391_v29 = vmax.f32 %v375_v25, 0.0  ;;  %v392_v30 = vmax.f32 %v376_v26, 0.0  ;;  %v389_v31 = vmax.f32 %v373_v27, 0.0 }
  0xae   : > { %v390_v32 = vmax.f32 %v374_v28, 0.0 }
  0xaf   : > { %408 = vst.msk [vmem:[%s770_s27 + $0x70] sm:$0xff] %vm393_vm0, %v391_v29  ;;  %409 = vst.msk [vmem:[%s770_s27 + $0x78] sm:$0xff] %vm393_vm0, %v392_v30 }
  0xb0   : > { %406 = vst.msk [vmem:[%s770_s27 + $0x60] sm:$0xff] %vm393_vm0, %v389_v31  ;;  %407 = vst.msk [vmem:[%s770_s27 + $0x68] sm:$0xff] %vm393_vm0, %v390_v32 }
  0xb1   : > { %573 = shalt.err (!%p570_p3)
}
  0xb2   : > { %s574_s10 = scalar_lea.hbm %s809_s4, 2048  ;;  %s578_s19 = scalar_lea.hbm %s867_s3, 4096 }
  0xb3   : > { %p575_p4 = scmp.ne.s32.totalorder %s809_s4, %s574_s10  ;;  %p579_p9 = scmp.lt.u32.totalorder %s809_s4, %s867_s3 }
  0xb4   : > { %p580_p10 = scmp.lt.u32.totalorder %s578_s19, %s574_s10  ;;  %p582_p12 = scmp.lt.u32.totalorder %s574_s10, %s809_s4 }
  0xb5   : > { %p576_p7 = pnand %p575_p4, %p686_p5 }
  0xb6   : > { %p581_p11 = por %p580_p10, %p579_p9 }
  0xb7   : > { %p577_p8 = pneg %p576_p7 }
  0xb8   : > { %p583_p13 = por %p582_p12, %p581_p11 }
  0xba   : > { %p584_p0 = pnand %p583_p13, %p577_p8 }
  0xbc   : > { %587 = shalt.err (!%p584_p0)
}
  0xbd   : > { %s626_s25 = smov 128   ;;  %s627_s26 = smov 8  }
  0xbe   : > { %516 = dma.vmem_to_hbm [thread:$0]  (%p686_p5), %s811_s29, 2048, %s809_s4, %s823_s5, %s626_s25, %s626_s25, %s627_s26  }
  0xbf PF: > { %p522_p1 = scmp.ge.s32.totalorder %s622_s15, 2  ;;  %s439_s27 = sand.u32 1, %s610_s12  }
  0xc0   : > { %s440_s28 = scalar_lea.sflag [#allocation3], %s439_s27 }
  0xc1   : > { %p519_p2 = pnand %p522_p1, %p690_p6 }
  0xc3   : > { %605 = dma.done.wait (!%p519_p2), %s440_s28, 2048  }
  0xc4   : > { %607 = vsyncadd (!%p519_p2), %s440_s28, 4294965248  ;;  %p13_p3 = scmp.ge.s32.totalorder %s673_s18, 4   ;;  %s870_s12 = smov %s614_s13 }
  0xc5   : > { %s871_s13 = smov %s618_s14  ;;  %s872_s14 = smov %s684_s21 }
  0xc6   : > { %s873_s15 = smov %s673_s18  ;;  %15 = sbr.rel (!%p13_p3) target bundleno = 3 (0x3), region = 67 }
  0xcd   :  { %445 = vsyncpa [#allocation3], 1 }
  0xce   :  { %447 = vsyncpa [#allocation3 + $0x1], 1 }

// kernel: conv_bn_relu.2
= control target key start
LH: loop header
LB: loop body
LE: loop exit
PB: predicated region body
PF: predicated region fallthrough
CT: control target
= control target key end

     0   :  { %s2136_s18 = smov 0   ;;  %s2301_s0 = inlined_call_operand.vmem [shape: f32[2,4,326], index: 0, kind: input, shape index: {}]   ;;  %s2302_s1 = inlined_call_operand.vmem [shape: f32[9,8,4], index: 1, kind: input, shape index: {}]   ;;  %s2303_s2 = inlined_call_operand.vmem [shape: f32[1,288], index: 2, kind: input, shape index: {}]   ;;  %s2304_s3 = inlined_call_operand.vmem [shape: f32[2,8,288], index: 3, kind: output, shape index: {0}]   ;;  %s2305_s4 = inlined_call_operand.vmem [shape: f32[2,8,1], index: 4, kind: output, shape index: {1}]   ;;  %s2306_s5 = inlined_call_operand.vmem [shape: f32[2,8,1], index: 5, kind: output, shape index: {2}]  }
   0x1 LB: > { %s1908_s19 = sadd.s32 4294967295, %s2094_s18   ;;  %p1912_p0 = scmp.ge.s32.totalorder %s2094_s18, 1  ;;  %s2094_s18 = sphi %s2136_s18, %s16_s18  }
   0x2   : > { %p192_p1 = scmp.lt.s32.totalorder %s2094_s18, 3 }
   0x4   : > { %p193_p2 = pnand %p1912_p0, %p192_p1 }
   0x5   : > { %p228_p3 = scmp.lt.s32.totalorder (!%p193_p2), %s1908_s19, 1  ;;  %v2096_v0 = vmov (!%p193_p2), 0.0   ;;  %vm2097_vm0 = vmmov (!%p193_p2), 0   ;;  %s2098_s24 = smov (!%p193_p2), 127   ;;  %vm267_vm1 = vcmask (!%p193_p2), 1043456   ;;  %vm260_vm2 = vcmask (!%p193_p2), 1039360  }
   0x6   : > { %196 = sbr.rel (%p193_p2) target bundleno = 570 (0x23a), region = 32  ;;  %1990 = vmatprep.subr.mxu1 (!%p193_p2), %v2096_v0  ;;  %1992 = vmatprep.mubr.msk.f32.mxu1 (!%p193_p2), %vm2097_vm0, %v2096_v0  ;;  %s2099_s25 = smov (!%p193_p2), 126   ;;  %v1917_v14 = vld [vmem:[%s2302_s1 + $0x8] sm:$0xff] (!%p193_p2)  ;;  %vm263_vm3 = vcmask (!%p193_p2), 31744   ;;  %vm578_vm4 = vcmask (!%p193_p2), 1031168   ;;  %v248_v21 = vld [vmem:[%s2302_s1] sm:$0xff] (!%p193_p2)  ;;  %v1754_v60 = vlaneseq (!%p193_p2) }
   0x7   : > { %338 = vmatprep.mubr.f32.mxu0 (!%p193_p2), %v2096_v0  ;;  %s2100_s26 = smov (!%p193_p2), 110   ;;  %s2101_s27 = smov (!%p193_p2), 109   ;;  %vm747_vm5 = vcmask (!%p193_p2), 900096   ;;  %v1928_v28 = vld [vmem:[%s2302_s1 + $0x10] sm:$0xff] (!%p193_p2)  ;;  %vm916_vm6 = vcmask (!%p193_p2), 891904   ;;  %v1934_v34 = vld [vmem:[%s2302_s1 + $0x18] sm:$0xff] (!%p193_p2) }
   0x8   : > { %s2102_s28 = smov (!%p193_p2), 108   ;;  %s2103_s29 = smov (!%p193_p2), 92   ;;  %vm1085_vm7 = vcmask (!%p193_p2), 883712   ;;  %v1940_v40 = vld [vmem:[%s2302_s1 + $0x20] sm:$0xff] (!%p193_p2)  ;;  %vm1254_vm8 = vcmask (!%p193_p2), 752640   ;;  %v1946_v46 = vld [vmem:[%s2302_s1 + $0x28] sm:$0xff] (!%p193_p2) }
   0x9   : > { %s2104_s30 = smov (!%p193_p2), 91   ;;  %s2105_s6 = smov (!%p193_p2), 90   ;;  %vm1423_vm9 = vcmask (!%p193_p2), 744448   ;;  %v1952_v51 = vld [vmem:[%s2302_s1 + $0x30] sm:$0xff] (!%p193_p2)  ;;  %vm1592_vm10 = vcmask (!%p193_p2), 736256   ;;  %v1958_v57 = vld [vmem:[%s2302_s1 + $0x38] sm:$0xff] (!%p193_p2) }
   0xa   : > { %v1964_v59 = vld [vmem:[%s2302_s1 + $0x40] sm:$0xff] (!%p193_p2)  ;;  %v1755_v61 = vshrl.u32 (!%p193_p2), %v1754_v60, 7  ;;  %vm1750_vm11 = vcmask (!%p193_p2), 261120   ;;  %vm1777_vm12 = vcmask (!%p193_p2), 7168  }
   0xc   : > { %v1764_v62 = vsub.s32 (!%p193_p2), 2, %v1755_v61  ;;  %v1756_v63 = vsub.s32 (!%p193_p2), 0, %v1755_v61 }
   0xd   : > { %s2308_s19 = smov (!%p228_p3, %s1908_s19), 1 }
   0xe   : > { %s2067_s20 = smul.u32 12, %s2308_s19  ;;  %s1915_s8 = sshll.u32 %s2308_s19, 3 }
   0xf   : > { %s241_s11 = scalar_lea.vmem %s2305_s4, %s1915_s8  ;;  %s245_s14 = scalar_lea.vmem %s2306_s5, %s1915_s8 }
  0x10   : > { %s2154_s23 = scalar_lea.vmem %s2301_s0, %s2067_s20 }
  0x11   : > { %v246_v1 = vld [vmem:[%s2154_s23] sm:$0xff]  ;;  %v247_v3 = vld [vmem:[%s2154_s23 + $0x8] sm:$0xf] }
  0x12   : > { %254 = vrot.lane.b32.xlu1 %v246_v1, %s2098_s24  ;;  %v253_v2 = vcombine.high %v246_v1, %v246_v1  ;;  %v566_v4 = vld [vmem:[%s2154_s23 + $0x8] sm:$0xf] }
  0x13   : > { %v735_v5 = vld [vmem:[%s2154_s23 + $0x8] sm:$0xf] }
  0x14   : > { %256 = vrot.lane.b32.xlu0 %v253_v2, %s2098_s24  ;;  %v904_v6 = vld [vmem:[%s2154_s23 + $0x8] sm:$0xf] }
  0x15   : > { %v1073_v7 = vld [vmem:[%s2154_s23 + $0x8] sm:$0xf] }
  0x16   : > { %574 = vrot.lane.b32.xlu1 %v253_v2, %s2099_s25  ;;  %v1242_v8 = vld [vmem:[%s2154_s23 + $0x8] sm:$0xf] }
  0x17   : > { %v1411_v9 = vld [vmem:[%s2154_s23 + $0x8] sm:$0xf] }
  0x18   : > { %258 = vrot.lane.b32.xlu0 %v247_v3, %s2098_s24  ;;  %v1580_v10 = vld [vmem:[%s2154_s23 + $0x8] sm:$0xf] }
  0x1a   : > { %572 = vrot.lane.b32.xlu1 %v246_v1, %s2099_s25 }
  0x1c   : > { %576 = vrot.lane.b32.xlu0 %v566_v4, %s2099_s25 }
  0x1e   : > { %745 = vrot.lane.b32.xlu1 %v735_v5, %s2100_s26 }
  0x20   : > { %743 = vrot.lane.b32.xlu0 %v253_v2, %s2100_s26 }
  0x22   : > { %912 = vrot.lane.b32.xlu1 %v253_v2, %s2101_s27 }
  0x24   : > { %741 = vrot.lane.b32.xlu0 %v246_v1, %s2100_s26 }
  0x26   : > { %910 = vrot.lane.b32.xlu1 %v246_v1, %s2101_s27 }
  0x28   : > { %914 = vrot.lane.b32.xlu0 %v904_v6, %s2101_s27  ;;  %s2068_s27 = smul.u32 24, %s2308_s19 }
  0x2a   : > { %1083 = vrot.lane.b32.xlu1 %v1073_v7, %s2102_s28  ;;  %s237_s7 = scalar_lea.vmem %s2304_s3, %s2068_s27 }
  0x2c   : > { %1081 = vrot.lane.b32.xlu0 %v253_v2, %s2102_s28 }
  0x2e   : > { %1250 = vrot.lane.b32.xlu1 %v253_v2, %s2103_s29 }
  0x30   : > { %1079 = vrot.lane.b32.xlu0 %v246_v1, %s2102_s28 }
  0x32   : > { %1248 = vrot.lane.b32.xlu1 %v246_v1, %s2103_s29 }
  0x34   : > { %1252 = vrot.lane.b32.xlu0 %v1242_v8, %s2103_s29 }
  0x36   : > { %1421 = vrot.lane.b32.xlu1 %v1411_v9, %s2104_s30 }
  0x38   : > { %1419 = vrot.lane.b32.xlu0 %v253_v2, %s2104_s30 }
  0x3a   : > { %1588 = vrot.lane.b32.xlu1 %v253_v2, %s2105_s6 }
  0x3c   : > { %1417 = vrot.lane.b32.xlu0 %v246_v1, %s2104_s30 }
  0x3e   : > { %1586 = vrot.lane.b32.xlu1 %v246_v1, %s2105_s6 }
  0x40   : > { %1590 = vrot.lane.b32.xlu0 %v1580_v10, %s2105_s6 }
  0x84   : > { %v255_v11 = vpop.permute.xlu1 %254 }
  0x86   : > { %v257_v12 = vpop.permute.xlu0 %256 }
  0x87   : > { %v261_v17 = vsel %vm260_vm2, %v255_v11, %v257_v12 }
  0x88   : > { %v575_v13 = vpop.permute.xlu1 %574 }
  0x8a   : > { %v259_v15 = vpop.permute.xlu0 %258 }
  0x8b   : > { %1991 = vmatpush3.msk.msra.mxu1 %vm267_vm1, %v259_v15  ;;  %v262_v16 = vsel %vm260_vm2, %v257_v12, %v259_v15 }
  0x8c   : > { %1918 = vmatprep.subr.msk.mxu0 %vm267_vm1, %v262_v16  ;;  %1993 = vmatmul.mubr.msk.f32.vlgmr.msra.gmra.mrb[0].mxu1 %vm263_vm3, %v1917_v14  ;;  %v573_v18 = vpop.permute.xlu1 %572 }
  0x8d   : > { %1919 = vmatpush1.msk.msra.mxu0 %vm267_vm1, %v261_v17  ;;  %1995 = vmatprep.subr.mxu1 %v2096_v0  ;;  %v579_v24 = vsel %vm578_vm4, %v573_v18, %v575_v13 }
  0x8e   : > { %1920 = vmatmul.mubr.msk.f32.vlgmr.msra.gmra.mrb[0].mxu0 %vm263_vm3, %v1917_v14  ;;  %1923 = vmatprep.subr.msk.mxu0 %vm267_vm1, %v253_v2  ;;  %v577_v19 = vpop.permute.xlu0 %576  ;;  %v1760_v2 = vsub.s32 1, %v1755_v61 }
  0x8f   : > { %1924 = vmatpush1.msk.msra.mxu0 %vm267_vm1, %v246_v1  ;;  %1996 = vmatpush3.msk.msra.mxu1 %vm267_vm1, %v247_v3  ;;  %v580_v20 = vsel %vm578_vm4, %v575_v13, %v577_v19  ;;  %v1752_v1 = vld [vmem:[%s2303_s2] sm:$0x7] }
  0x90   : > { %1997 = vmatprep.mubr.msk.f32.mxu1 %vm2097_vm0, %v2096_v0  ;;  %1929 = vmatprep.subr.msk.mxu0 %vm267_vm1, %v580_v20  ;;  %v746_v23 = vpop.permute.xlu1 %745  ;;  %v1757_v3 = vrot.slane %v1752_v1, %v1756_v63  ;;  %v1761_v5 = vrot.slane %v1752_v1, %v1760_v2 }
  0x91   : > { %2000 = vmatprep.subr.mxu1 %v2096_v0  ;;  %488 = vmatprep.mubr.f32.mxu0 %v2096_v0 }
  0x92   : > { %v744_v22 = vpop.permute.xlu0 %743 }
  0x93   : > { %v749_v25 = vsel %vm747_vm5, %v744_v22, %v746_v23 }
  0x94   : > { %1998 = vmatmul.mubr.msk.f32.vlgmr.msra.gmra.mrb[0].mxu1 %vm263_vm3, %v248_v21  ;;  %v913_v27 = vpop.permute.xlu1 %912 }
  0x95   : > { %2001 = vmatpush3.msk.msra.mxu1 %vm267_vm1, %v577_v19  ;;  %2002 = vmatprep.mubr.msk.f32.mxu1 %vm2097_vm0, %v2096_v0 }
  0x96   : > { %1925 = vmatmul.mubr.msk.f32.vlgmr.msra.gmra.mrb[0].mxu0 %vm263_vm3, %v248_v21  ;;  %v742_v26 = vpop.permute.xlu0 %741  ;;  %2005 = vmatprep.subr.mxu1 %v2096_v0 }
  0x97   : > { %1930 = vmatpush1.msk.msra.mxu0 %vm267_vm1, %v579_v24  ;;  %654 = vmatprep.mubr.f32.mxu0 %v2096_v0  ;;  %v748_v30 = vsel %vm747_vm5, %v742_v26, %v744_v22 }
  0x98   : > { %1935 = vmatprep.subr.msk.mxu0 %vm267_vm1, %v749_v25  ;;  %v911_v32 = vpop.permute.xlu1 %910 }
  0x99   : > { %v917_v36 = vsel %vm916_vm6, %v911_v32, %v913_v27 }
  0x9a   : > { %v915_v29 = vpop.permute.xlu0 %914 }
  0x9b   : > { %v918_v31 = vsel %vm916_vm6, %v913_v27, %v915_v29 }
  0x9c   : > { %2003 = vmatmul.mubr.msk.f32.vlgmr.msra.gmra.mrb[0].mxu1 %vm263_vm3, %v1928_v28  ;;  %v1084_v35 = vpop.permute.xlu1 %1083 }
  0x9d   : > { %2006 = vmatpush3.msk.msra.mxu1 %vm267_vm1, %v746_v23  ;;  %2007 = vmatprep.mubr.msk.f32.mxu1 %vm2097_vm0, %v2096_v0 }
  0x9e   : > { %1931 = vmatmul.mubr.msk.f32.vlgmr.msra.gmra.mrb[0].mxu0 %vm263_vm3, %v1928_v28  ;;  %2010 = vmatprep.subr.mxu1 %v2096_v0  ;;  %v1082_v33 = vpop.permute.xlu0 %1081 }
  0x9f   : > { %1936 = vmatpush1.msk.msra.mxu0 %vm267_vm1, %v748_v30  ;;  %823 = vmatprep.mubr.f32.mxu0 %v2096_v0  ;;  %v1087_v37 = vsel %vm1085_vm7, %v1082_v33, %v1084_v35 }
  0xa0   : > { %1941 = vmatprep.subr.msk.mxu0 %vm267_vm1, %v918_v31  ;;  %v1251_v39 = vpop.permute.xlu1 %1250 }
  0xa2   : > { %v1080_v38 = vpop.permute.xlu0 %1079 }
  0xa3   : > { %v1086_v42 = vsel %vm1085_vm7, %v1080_v38, %v1082_v33 }
  0xa4   : > { %2008 = vmatmul.mubr.msk.f32.vlgmr.msra.gmra.mrb[0].mxu1 %vm263_vm3, %v1934_v34  ;;  %v1249_v44 = vpop.permute.xlu1 %1248 }
  0xa5   : > { %2011 = vmatpush3.msk.msra.mxu1 %vm267_vm1, %v915_v29  ;;  %2012 = vmatprep.mubr.msk.f32.mxu1 %vm2097_vm0, %v2096_v0  ;;  %v1255_v48 = vsel %vm1254_vm8, %v1249_v44, %v1251_v39 }
  0xa6   : > { %1937 = vmatmul.mubr.msk.f32.vlgmr.msra.gmra.mrb[0].mxu0 %vm263_vm3, %v1934_v34  ;;  %2015 = vmatprep.subr.mxu1 %v2096_v0  ;;  %v1253_v41 = vpop.permute.xlu0 %1252 }
  0xa7   : > { %1942 = vmatpush1.msk.msra.mxu0 %vm267_vm1, %v917_v36  ;;  %992 = vmatprep.mubr.f32.mxu0 %v2096_v0  ;;  %v1256_v43 = vsel %vm1254_vm8, %v1251_v39, %v1253_v41 }
  0xa8   : > { %1947 = vmatprep.subr.msk.mxu0 %vm267_vm1, %v1087_v37  ;;  %v1422_v47 = vpop.permute.xlu1 %1421 }
  0xaa   : > { %v1420_v45 = vpop.permute.xlu0 %1419 }
  0xab   : > { %v1425_v49 = vsel %vm1423_vm9, %v1420_v45, %v1422_v47 }
  0xac   : > { %2013 = vmatmul.mubr.msk.f32.vlgmr.msra.gmra.mrb[0].mxu1 %vm263_vm3, %v1940_v40  ;;  %v1589_v53 = vpop.permute.xlu1 %1588 }
  0xad   : > { %2016 = vmatpush3.msk.msra.mxu1 %vm267_vm1, %v1084_v35  ;;  %2017 = vmatprep.mubr.msk.f32.mxu1 %vm2097_vm0, %v2096_v0 }
  0xae   : > { %1943 = vmatmul.mubr.msk.f32.vlgmr.msra.gmra.mrb[0].mxu0 %vm263_vm3, %v1940_v40  ;;  %2020 = vmatprep.subr.mxu1 %v2096_v0  ;;  %v1418_v50 = vpop.permute.xlu0 %1417 }
  0xaf   : > { %1948 = vmatpush1.msk.msra.mxu0 %vm267_vm1, %v1086_v42  ;;  %1161 = vmatprep.mubr.f32.mxu0 %v2096_v0  ;;  %v1424_v54 = vsel %vm1423_vm9, %v1418_v50, %v1420_v45 }
  0xb0   : > { %1953 = vmatprep.subr.msk.mxu0 %vm267_vm1, %v1256_v43  ;;  %v1587_v56 = vpop.permute.xlu1 %1586 }
  0xb1   : > { %v1593_v58 = vsel %vm1592_vm10, %v1587_v56, %v1589_v53 }
  0xb2   : > { %v1591_v52 = vpop.permute.xlu0 %1590 }
  0xb3   : > { %v1594_v55 = vsel %vm1592_vm10, %v1589_v53, %v1591_v52 }
  0xb4   : > { %2018 = vmatmul.mubr.msk.f32.vlgmr.msra.gmra.mrb[0].mxu1 %vm263_vm3, %v1946_v46 }
  0xb5   : > { %2021 = vmatpush3.msk.msra.mxu1 %vm267_vm1, %v1253_v41  ;;  %2022 = vmatprep.mubr.msk.f32.mxu1 %vm2097_vm0, %v2096_v0 }
  0xb6   : > { %1949 = vmatmul.mubr.msk.f32.vlgmr.msra.gmra.mrb[0].mxu0 %vm263_vm3, %v1946_v46  ;;  %2025 = vmatprep.subr.mxu1 %v2096_v0 }
  0xb7   : > { %1954 = vmatpush1.msk.msra.mxu0 %vm267_vm1, %v1255_v48  ;;  %1330 = vmatprep.mubr.f32.mxu0 %v2096_v0 }
  0xb8   : > { %1959 = vmatprep.subr.msk.mxu0 %vm267_vm1, %v1425_v49 }
  0xbc   : > { %2023 = vmatmul.mubr.msk.f32.vlgmr.msra.gmra.mrb[0].mxu1 %vm263_vm3, %v1952_v51 }
  0xbd   : > { %2026 = vmatpush3.msk.msra.mxu1 %vm267_vm1, %v1422_v47  ;;  %2027 = vmatprep.mubr.msk.f32.mxu1 %vm2097_vm0, %v2096_v0 }
  0xbe   : > { %1955 = vmatmul.mubr.msk.f32.vlgmr.msra.gmra.mrb[0].mxu0 %vm263_vm3, %v1952_v51  ;;  %2030 = vmatprep.subr.mxu1 %v2096_v0 }
  0xbf   : > { %1960 = vmatpush1.msk.msra.mxu0 %vm267_vm1, %v1424_v54  ;;  %1499 = vmatprep.mubr.f32.mxu0 %v2096_v0 }
  0xc0   : > { %1965 = vmatprep.subr.msk.mxu0 %vm267_vm1, %v1594_v55 }
  0xc4   : > { %2028 = vmatmul.mubr.msk.f32.vlgmr.msra.gmra.mrb[0].mxu1 %vm263_vm3, %v1958_v57 }
  0xc5   : > { %2031 = vmatpush3.msk.msra.mxu1 %vm267_vm1, %v1591_v52  ;;  %2032 = vmatprep.mubr.msk.f32.mxu1 %vm2097_vm0, %v2096_v0 }
  0xc6   : > { %1961 = vmatmul.mubr.msk.f32.vlgmr.msra.gmra.mrb[0].mxu0 %vm263_vm3, %v1958_v57 }
  0xc7   : > { %1966 = vmatpush1.msk.msra.mxu0 %vm267_vm1, %v1593_v58  ;;  %1668 = vmatprep.mubr.f32.mxu0 %v2096_v0  ;;  %v1765_v0 = vrot.slane %v1752_v1, %v1764_v62 }
  0xcc   : > { %2033 = vmatmul.mubr.msk.f32.vlgmr.msra.gmra.mrb[0].mxu1 %vm263_vm3, %v1964_v59 }
  0xce   : > { %1967 = vmatmul.mubr.msk.f32.vlgmr.msra.gmra.mrb[0].mxu0 %vm263_vm3, %v1964_v59 }
 0x19f   : > { %v1741_v4 = vpop.f32.mrb[0].mxu1 }
 0x1a0   : > { %1751 = vst.msk [vmem:[%s237_s7 + $0x10] sm:$0xff] %vm1750_vm11, %v1741_v4  ;;  %v1781_v6 = vmul.f32 %v1741_v4, %v1741_v4  ;;  %v2034_v7 = vpop.f32.mrb[1].mxu1  ;;  %v1771_v9 = vmul.f32 %v1765_v0, %v1741_v4 }
 0x1a1   : > { %v1670_v8 = vpop.f32.mrb[0].mxu0 }
 0x1a2   : > { %1748 = vst [vmem:[%s237_s7] sm:$0xff] %v1670_v8  ;;  %v1769_v10 = vmul.f32 %v1757_v3, %v1670_v8  ;;  %v1779_v11 = vmul.f32 %v1670_v8, %v1670_v8  ;;  %v1672_v12 = vpop.f32.mrb[1].mxu0  ;;  %v1784_v16 = vmul.f32 %v1781_v6, %v1765_v0  ;;  %v1773_v19 = vsel %vm1750_vm11, %v1771_v9, 0.0 }
 0x1a3   : > { %1749 = vst [vmem:[%s237_s7 + $0x8] sm:$0xff] %v1672_v12  ;;  %v1770_v13 = vmul.f32 %v1761_v5, %v1672_v12  ;;  %v1780_v14 = vmul.f32 %v1672_v12, %v1672_v12 }
 0x1a4   : > { %v1782_v15 = vmul.f32 %v1779_v11, %v1757_v3  ;;  %v1786_v22 = vsel %vm1750_vm11, %v1784_v16, 0.0 }
 0x1a5   : > { %v1783_v17 = vmul.f32 %v1780_v14, %v1761_v5  ;;  %v1772_v18 = vadd.f32 %v1770_v13, %v1769_v10 }
 0x1a7   : > { %v1774_v20 = vadd.f32 %v1773_v19, %v1772_v18  ;;  %v1785_v21 = vadd.f32 %v1783_v17, %v1782_v15 }
 0x1a9   : > { %1775 = vadd.xlane.f32.xlu0 %v1774_v20  ;;  %v1787_v23 = vadd.f32 %v1786_v22, %v1785_v21 }
 0x1ab   : > { %1788 = vadd.xlane.f32.xlu1 %v1787_v23 }
 0x236   : > { %v1776_v24 = vpop.xlane.xlu0 %1775 }
 0x237   : > { %1778 = vst.msk [vmem:[%s241_s11] sm:$0xff] %vm1777_vm12, %v1776_v24 }
 0x238   : > { %v1789_v25 = vpop.xlane.xlu1 %1788 }
 0x239   : > { %1790 = vst.msk [vmem:[%s245_s14] sm:$0xff] %vm1777_vm12, %v1789_v25 }
 0x23a PF: > { %s16_s18 = sadd.s32 1, %s2094_s18  }
 0x23b   : > { %p13_p4 = scmp.ge.s32.totalorder %s16_s18, 4  }
 0x23d   :  { %15 = sbr.rel (!%p13_p4) target bundleno = 1 (0x1), region = 94 }

</bundles_post_ra>
